<compile_context>
chip_gen: v6e
topology: v6e:2x2x1
jax: 0.10.0
libtpu: 0.0.40
codegen_flags: <defaults>
</compile_context>

<pallas_src>
import functools

import jax
import jax.numpy as jnp
from jax.experimental import pallas as pl
from jax.experimental.pallas import tpu as pltpu


def _cdiv(a: int, b: int) -> int:
    return -(-a // b)


def _round_down_128(v: int) -> int:
    return (v // 128) * 128


def _round_up_128(v: int) -> int:
    return _cdiv(v, 128) * 128


def _pick_group(n: int, cin: int) -> int:
    """Images per grid step: smallest divisor of n whose channel-row count
    fills whole 8-sublane tiles, else the largest divisor of n that is <= 8."""
    best = 1
    for g in range(1, min(n, 8) + 1):
        if n % g:
            continue
        best = g
        if (g * cin) % 8 == 0:
            return g
    return best


def _conv1x1_kernel(x_ref, w_ref, b_ref, o_ref):
    # x_ref: (G, Cin, T)   activation tile, pixels on the lane axis
    # w_ref: (Cout, Cin)   full weight matrix (tiny, resident in VMEM)
    # b_ref: (Cout, 1)     bias column
    # o_ref: (G, Cout, T)  output tile, lane-dense along pixels
    w = w_ref[...].astype(jnp.float32)
    b = b_ref[...].astype(jnp.float32)
    g_imgs, cin, _ = x_ref.shape
    cout = w.shape[0]

    for g in range(g_imgs):                     # static unroll over grouped images
        x = x_ref[g].astype(jnp.float32)        # (Cin, T) slab
        if cin <= 8 and cout <= 8:
            # Tiny contraction: VPU broadcast-FMA chain (skip the MXU), with
            # the bias folded into the first term (saves a full (Cout,T) pass).
            acc = w[:, 0:1] * x[0:1, :] + b
            for ci in range(1, cin):            # static unrolled, Cin small
                acc = acc + w[:, ci:ci + 1] * x[ci:ci + 1, :]
        else:
            # Generic path for larger channel counts.
            acc = jnp.dot(w, x, preferred_element_type=jnp.float32) + b
        o_ref[g] = acc.astype(o_ref.dtype)


@functools.partial(jax.jit, static_argnames=("target_block_bytes",))
def outconv_forward(x_nchw, weight, bias, *, target_block_bytes=8 << 20):
    """Forward of `outconv`: y = Conv2d(in_ch, out_ch, 1)(x).

    x_nchw : (N, C_in, H, W)
    weight : (C_out, C_in, 1, 1)   (PyTorch conv weight layout)
    bias   : (C_out,)
    returns: (N, C_out, H, W)
    """
    N, Cin, H, W = x_nchw.shape
    Cout = weight.shape[0]
    HW = H * W
    itemsize = jnp.dtype(x_nchw.dtype).itemsize

    # Free reshapes (no data movement): NCHW -> (N, Cin, H*W).
    x_rows = x_nchw.reshape(N, Cin, HW)
    w_mat = weight.reshape(Cout, Cin)
    b_col = bias.reshape(Cout, 1)

    # ---- Tiling ---------------------------------------------------------
    G = _pick_group(N, Cin)           # images per grid step (divisor of N)
    n_groups = N // G

    # VMEM tiles pad the channel axis up to 8 sublanes; budget the pixel tile
    # against the *padded* per-pixel footprint (input + output).
    cin_pad = _cdiv(Cin, 8) * 8
    cout_pad = _cdiv(Cout, 8) * 8
    bytes_per_px = G * (cin_pad + cout_pad) * itemsize

    if HW <= 128:
        t = HW                                            # single full-width block
    else:
        t = max(128, _round_down_128(target_block_bytes // bytes_per_px))
        t = min(t, _round_down_128(HW))
        # Keep >= 2 grid steps when the image allows: both v7x TensorCores get
        # work and the pipeline has something to overlap with.
        if n_groups * _cdiv(HW, t) < 2:
            t = min(_round_down_128(HW), max(128, _round_up_128(_cdiv(HW, 2))))

    grid = (n_groups, _cdiv(HW, t))

    # Explicit scoped-VMEM limit: double-buffered padded I/O tiles plus f32
    # temporaries, with headroom; stays well under v7x's 64 MiB physical VMEM.
    io_tile_bytes = G * (cin_pad + cout_pad) * t * itemsize
    tmp_bytes = G * (cin_pad + cout_pad) * t * 4
    vmem_limit = int(min(48 << 20,
                         max(32 << 20, 2 * io_tile_bytes + tmp_bytes + (4 << 20))))

    out = pl.pallas_call(
        _conv1x1_kernel,
        out_shape=jax.ShapeDtypeStruct((N, Cout, HW), x_nchw.dtype),
        grid_spec=pltpu.PrefetchScalarGridSpec(
            num_scalar_prefetch=0,
            grid=grid,
            in_specs=[
                pl.BlockSpec((G, Cin, t), lambda n, j: (n, 0, j)),
                # Weight/bias are tiny and grid-invariant; keeping them as small
                # resident VMEM blocks is the robust lowering path.
                pl.BlockSpec((Cout, Cin), lambda n, j: (0, 0)),
                pl.BlockSpec((Cout, 1), lambda n, j: (0, 0)),
            ],
            out_specs=pl.BlockSpec((G, Cout, t), lambda n, j: (n, 0, j)),
        ),
        compiler_params=pltpu.CompilerParams(
            dimension_semantics=("parallel", "parallel"),
            vmem_limit_bytes=vmem_limit,
        ),
    )(x_rows, w_mat, b_col)

    # Free reshape back to NCHW.
    return out.reshape(N, Cout, H, W)


def _reference(x_nchw, weight, bias):
    # Pure-JAX reference for the 1x1 conv (NCHW).
    w = weight.reshape(weight.shape[0], weight.shape[1])     # (Cout, Cin)
    y = jnp.einsum("nchw,oc->nohw", x_nchw, w)
    return y + bias.reshape(1, -1, 1, 1)


if __name__ == "__main__":
    key = jax.random.PRNGKey(0)
    k_x, k_w, k_b = jax.random.split(key, 3)

    N, Cin, H, W = 2, 4, 16, 16
    Cout = 3

    x = jax.random.normal(k_x, (N, Cin, H, W), dtype=jnp.float32)
    # Deterministic synthetic params (shapes per nn.Conv2d(in_ch, out_ch, 1)).
    weight = jax.random.normal(k_w, (Cout, Cin, 1, 1), dtype=jnp.float32) * 0.1
    bias = jax.random.normal(k_b, (Cout,), dtype=jnp.float32) * 0.1

    y = outconv_forward(x, weight, bias)
    y = jax.block_until_ready(y)

    y_ref = _reference(x, weight, bias)
    assert y.shape == (N, Cout, H, W)
    assert jnp.allclose(y, y_ref, atol=1e-5, rtol=1e-5)

    print("KERNEL_OK")
</pallas_src>

<mosaic_0001>
module attributes {stable_mosaic.version = 11 : i64} {
  func.func @_conv1x1_kernel(%arg0: i32, %arg1: i32, %arg2: memref<2x4x128xf32, #tpu.memory_space<vmem>>, %arg3: memref<3x4xf32, #tpu.memory_space<vmem>>, %arg4: memref<3x1xf32, #tpu.memory_space<vmem>>, %arg5: memref<2x3x128xf32, #tpu.memory_space<vmem>>) attributes {dimension_semantics = [#tpu.dimension_semantics<parallel>, #tpu.dimension_semantics<parallel>], iteration_bounds = array<i64: 1, 2>, scalar_prefetch = 0 : i64, scratch_operands = 0 : i64, tpu.core_type = #tpu.core_type<tc>, window_params = [{transform_indices = @transform_0, window_bounds = array<i64: 2, 4, 128>}, {pipeline_mode = #tpu.pipeline_mode<synchronous>, transform_indices = @transform_1, window_bounds = array<i64: 3, 4>}, {pipeline_mode = #tpu.pipeline_mode<synchronous>, transform_indices = @transform_2, window_bounds = array<i64: 3, 1>}, {transform_indices = @transform_3, window_bounds = array<i64: 2, 3, 128>}]} {
    %c0 = arith.constant 0 : index
    %c0_0 = arith.constant 0 : index
    %0 = vector.load %arg3[%c0, %c0_0] : memref<3x4xf32, #tpu.memory_space<vmem>>, vector<3x4xf32>
    %c0_1 = arith.constant 0 : index
    %c0_2 = arith.constant 0 : index
    %1 = vector.load %arg4[%c0_1, %c0_2] : memref<3x1xf32, #tpu.memory_space<vmem>>, vector<3x1xf32>
    %c0_3 = arith.constant 0 : index
    %c0_4 = arith.constant 0 : index
    %c0_5 = arith.constant 0 : index
    %2 = vector.load %arg2[%c0_3, %c0_4, %c0_5] : memref<2x4x128xf32, #tpu.memory_space<vmem>>, vector<1x4x128xf32>
    %3 = vector.shape_cast %2 : vector<1x4x128xf32> to vector<4x128xf32>
    %4 = vector.extract_strided_slice %0 {offsets = [0, 0], sizes = [3, 1], strides = [1, 1]} : vector<3x4xf32> to vector<3x1xf32>
    %5 = vector.extract_strided_slice %3 {offsets = [0, 0], sizes = [1, 128], strides = [1, 1]} : vector<4x128xf32> to vector<1x128xf32>
    %6 = vector.broadcast %4 : vector<3x1xf32> to vector<3x128xf32>
    %7 = vector.broadcast %5 : vector<1x128xf32> to vector<3x128xf32>
    %8 = arith.mulf %6, %7 : vector<3x128xf32>
    %9 = vector.broadcast %1 : vector<3x1xf32> to vector<3x128xf32>
    %10 = arith.addf %8, %9 : vector<3x128xf32>
    %11 = vector.extract_strided_slice %0 {offsets = [0, 1], sizes = [3, 1], strides = [1, 1]} : vector<3x4xf32> to vector<3x1xf32>
    %12 = vector.extract_strided_slice %3 {offsets = [1, 0], sizes = [1, 128], strides = [1, 1]} : vector<4x128xf32> to vector<1x128xf32>
    %13 = vector.broadcast %11 : vector<3x1xf32> to vector<3x128xf32>
    %14 = vector.broadcast %12 : vector<1x128xf32> to vector<3x128xf32>
    %15 = arith.mulf %13, %14 : vector<3x128xf32>
    %16 = arith.addf %10, %15 : vector<3x128xf32>
    %17 = vector.extract_strided_slice %0 {offsets = [0, 2], sizes = [3, 1], strides = [1, 1]} : vector<3x4xf32> to vector<3x1xf32>
    %18 = vector.extract_strided_slice %3 {offsets = [2, 0], sizes = [1, 128], strides = [1, 1]} : vector<4x128xf32> to vector<1x128xf32>
    %19 = vector.broadcast %17 : vector<3x1xf32> to vector<3x128xf32>
    %20 = vector.broadcast %18 : vector<1x128xf32> to vector<3x128xf32>
    %21 = arith.mulf %19, %20 : vector<3x128xf32>
    %22 = arith.addf %16, %21 : vector<3x128xf32>
    %23 = vector.extract_strided_slice %0 {offsets = [0, 3], sizes = [3, 1], strides = [1, 1]} : vector<3x4xf32> to vector<3x1xf32>
    %24 = vector.extract_strided_slice %3 {offsets = [3, 0], sizes = [1, 128], strides = [1, 1]} : vector<4x128xf32> to vector<1x128xf32>
    %25 = vector.broadcast %23 : vector<3x1xf32> to vector<3x128xf32>
    %26 = vector.broadcast %24 : vector<1x128xf32> to vector<3x128xf32>
    %27 = arith.mulf %25, %26 : vector<3x128xf32>
    %28 = arith.addf %22, %27 : vector<3x128xf32>
    %c0_6 = arith.constant 0 : index
    %c0_7 = arith.constant 0 : index
    %c0_8 = arith.constant 0 : index
    %29 = vector.load %arg5[%c0_6, %c0_7, %c0_8] : memref<2x3x128xf32, #tpu.memory_space<vmem>>, vector<1x3x128xf32>
    %30 = vector.shape_cast %29 : vector<1x3x128xf32> to vector<3x128xf32>
    %31 = vector.shape_cast %28 : vector<3x128xf32> to vector<1x3x128xf32>
    tpu.vector_store %arg5[%c0_6, %c0_7, %c0_8], %31 {strides = array<i32>} : memref<2x3x128xf32, #tpu.memory_space<vmem>>, vector<1x3x128xf32>,
    %c1 = arith.constant 1 : index
    %c0_9 = arith.constant 0 : index
    %c0_10 = arith.constant 0 : index
    %32 = vector.load %arg2[%c1, %c0_9, %c0_10] : memref<2x4x128xf32, #tpu.memory_space<vmem>>, vector<1x4x128xf32>
    %33 = vector.shape_cast %32 : vector<1x4x128xf32> to vector<4x128xf32>
    %34 = vector.extract_strided_slice %0 {offsets = [0, 0], sizes = [3, 1], strides = [1, 1]} : vector<3x4xf32> to vector<3x1xf32>
    %35 = vector.extract_strided_slice %33 {offsets = [0, 0], sizes = [1, 128], strides = [1, 1]} : vector<4x128xf32> to vector<1x128xf32>
    %36 = vector.broadcast %34 : vector<3x1xf32> to vector<3x128xf32>
    %37 = vector.broadcast %35 : vector<1x128xf32> to vector<3x128xf32>
    %38 = arith.mulf %36, %37 : vector<3x128xf32>
    %39 = vector.broadcast %1 : vector<3x1xf32> to vector<3x128xf32>
    %40 = arith.addf %38, %39 : vector<3x128xf32>
    %41 = vector.extract_strided_slice %0 {offsets = [0, 1], sizes = [3, 1], strides = [1, 1]} : vector<3x4xf32> to vector<3x1xf32>
    %42 = vector.extract_strided_slice %33 {offsets = [1, 0], sizes = [1, 128], strides = [1, 1]} : vector<4x128xf32> to vector<1x128xf32>
    %43 = vector.broadcast %41 : vector<3x1xf32> to vector<3x128xf32>
    %44 = vector.broadcast %42 : vector<1x128xf32> to vector<3x128xf32>
    %45 = arith.mulf %43, %44 : vector<3x128xf32>
    %46 = arith.addf %40, %45 : vector<3x128xf32>
    %47 = vector.extract_strided_slice %0 {offsets = [0, 2], sizes = [3, 1], strides = [1, 1]} : vector<3x4xf32> to vector<3x1xf32>
    %48 = vector.extract_strided_slice %33 {offsets = [2, 0], sizes = [1, 128], strides = [1, 1]} : vector<4x128xf32> to vector<1x128xf32>
    %49 = vector.broadcast %47 : vector<3x1xf32> to vector<3x128xf32>
    %50 = vector.broadcast %48 : vector<1x128xf32> to vector<3x128xf32>
    %51 = arith.mulf %49, %50 : vector<3x128xf32>
    %52 = arith.addf %46, %51 : vector<3x128xf32>
    %53 = vector.extract_strided_slice %0 {offsets = [0, 3], sizes = [3, 1], strides = [1, 1]} : vector<3x4xf32> to vector<3x1xf32>
    %54 = vector.extract_strided_slice %33 {offsets = [3, 0], sizes = [1, 128], strides = [1, 1]} : vector<4x128xf32> to vector<1x128xf32>
    %55 = vector.broadcast %53 : vector<3x1xf32> to vector<3x128xf32>
    %56 = vector.broadcast %54 : vector<1x128xf32> to vector<3x128xf32>
    %57 = arith.mulf %55, %56 : vector<3x128xf32>
    %58 = arith.addf %52, %57 : vector<3x128xf32>
    %c1_11 = arith.constant 1 : index
    %c0_12 = arith.constant 0 : index
    %c0_13 = arith.constant 0 : index
    %59 = vector.load %arg5[%c1_11, %c0_12, %c0_13] : memref<2x3x128xf32, #tpu.memory_space<vmem>>, vector<1x3x128xf32>
    %60 = vector.shape_cast %59 : vector<1x3x128xf32> to vector<3x128xf32>
    %61 = vector.shape_cast %58 : vector<3x128xf32> to vector<1x3x128xf32>
    tpu.vector_store %arg5[%c1_11, %c0_12, %c0_13], %61 {strides = array<i32>} : memref<2x3x128xf32, #tpu.memory_space<vmem>>, vector<1x3x128xf32>,
    return
  }
  func.func @transform_0(%arg0: i32, %arg1: i32) -> (i32, i32, i32) {
    %c0_i32 = arith.constant 0 : i32
    %c0_i32_0 = arith.constant 0 : i32
    return %arg0, %c0_i32, %arg1 : i32, i32, i32
  }
  func.func @transform_1(%arg0: i32, %arg1: i32) -> (i32, i32) {
    %c0_i32 = arith.constant 0 : i32
    %c0_i32_0 = arith.constant 0 : i32
    %c0_i32_1 = arith.constant 0 : i32
    return %c0_i32, %c0_i32_0 : i32, i32
  }
  func.func @transform_2(%arg0: i32, %arg1: i32) -> (i32, i32) {
    %c0_i32 = arith.constant 0 : i32
    %c0_i32_0 = arith.constant 0 : i32
    %c0_i32_1 = arith.constant 0 : i32
    return %c0_i32, %c0_i32_0 : i32, i32
  }
  func.func @transform_3(%arg0: i32, %arg1: i32) -> (i32, i32, i32) {
    %c0_i32 = arith.constant 0 : i32
    %c0_i32_0 = arith.constant 0 : i32
    return %arg0, %c0_i32, %arg1 : i32, i32, i32
  }
}

</mosaic_0001>

<bundles_post_ra>
// kernel: outconv_forward.1
= control target key start
LH: loop header
LB: loop body
LE: loop exit
PB: predicated region body
PF: predicated region fallthrough
CT: control target
= control target key end

     0   :  { %s564_s12 = smov 0   ;;  %s566_s13 = smov 0   ;;  %s646_s0 = inlined_call_operand.vmem [shape: f32[2,4,256], index: 0, kind: input, shape index: {}]   ;;  %s647_s1 = inlined_call_operand.vmem [shape: f32[3,4], index: 1, kind: input, shape index: {}]   ;;  %s648_s2 = inlined_call_operand.vmem [shape: f32[3,1], index: 2, kind: input, shape index: {}]   ;;  %s649_s3 = inlined_call_operand.vmem [shape: f32[2,3,256], index: 3, kind: output, shape index: {}]  }
   0x1   :  { %s568_s14 = smov 0   ;;  %s570_s15 = smov 0  }
   0x2   :  { %s572_s16 = smov 0  }
   0x3 LB: > { %s22_s17 = sadd.s32 1, %s534_s15  ;;  %s437_s18 = sadd.s32 4294967295, %s538_s16   ;;  %s538_s16 = sphi %s572_s16, %s13_s16   ;;  %s534_s15 = sphi %s570_s15, %s654_s15   ;;  %s530_s14 = sphi %s568_s14, %s653_s14   ;;  %s526_s13 = sphi %s566_s13, %s652_s13   ;;  %s522_s12 = sphi %s564_s12, %s651_s12  }
   0x4   : > { %p23_p0 = scmp.ge.s32.totalorder %s22_s17, 2  ;;  %p41_p1 = scmp.ne.s32.totalorder %s526_s13, %s522_s12 }
   0x5   : > { %p42_p2 = scmp.eq.s32.totalorder %s538_s16, 0  ;;  %p115_p4 = scmp.eq.s32.totalorder %s437_s18, 1 }
   0x6   : > { %s656_s17 = smov (%p23_p0, %s22_s17), 0  ;;  %s34_s20 = sadd.s32 1, %s526_s13 }
   0x7   : > { %p43_p3 = por %p42_p2, %p41_p1  ;;  %s30_s19 = ssub.s32 %s534_s15, %s656_s17 }
   0x8   : > { %p32_p5 = scmp.eq.s32.totalorder %s30_s19, 0  ;;  %p599_p6 = por %p115_p4, %p41_p1 }
   0x9   : > { %p440_p7 = scmp.ge.s32.totalorder %s538_s16, 2 }
   0xa   : > { %s604_s22 = scalar_select %p32_p5, %s526_s13, %s34_s20  }
   0xb   : > { %143 = sbr.rel (%p440_p7) target bundleno = 21 (0x15), region = 24 }
  0x10   : > { %146 = sbr.rel (!%p43_p3) target bundleno = 21 (0x15), region = 28  ;;  %s148_s23 = sand.u32 (%p43_p3), 1, %s526_s13  }
  0x11   : > { %s442_s24 = sshll.u32 (%p43_p3), %s534_s15, 2  ;;  %s441_s25 = sshll.u32 (%p43_p3), %s148_s23, 3 }
  0x12   : > { %s155_s28 = scalar_lea.vmem (%p43_p3), %s646_s0, %s442_s24  ;;  %s150_s29 = scalar_lea.vmem (%p43_p3), [#allocation2], %s441_s25 }
  0x13   : > { %v172_v0 = vld [vmem:[%s155_s28] sm:$0xf] (%p43_p3)  ;;  %v174_v1 = vld [vmem:[%s155_s28 + $0x8] sm:$0xf] (%p43_p3) }
  0x14   : > { %173 = vst [vmem:[%s150_s29] sm:$0xf] (%p43_p3), %v172_v0  ;;  %175 = vst [vmem:[%s150_s29 + $0x4] sm:$0xf] (%p43_p3), %v174_v1 }
  0x15 PF: > { %p443_p8 = scmp.ge.s32.totalorder %s538_s16, 1  ;;  %p202_p9 = scmp.lt.s32.totalorder %s538_s16, 3 }
  0x17   : > { %p203_p10 = pnand %p443_p8, %p202_p9 }
  0x18   : > { %s209_s7 = sand.u32 (!%p203_p10), 1, %s522_s12  }
  0x19   : > { %206 = sbr.rel (%p203_p10) target bundleno = 178 (0xb2), region = 69  ;;  %s621_s8 = sshll.u32 (!%p203_p10), %s209_s7, 3 }
  0x1a   : > { %s211_s9 = scalar_lea.vmem (!%p203_p10), [#allocation2], %s621_s8  ;;  %s230_s10 = scalar_lea.vmem (!%p203_p10), [#allocation3], %s621_s8 }
  0x1e   : > { %v233_v2 = vld [vmem:[%s647_s1] sm:$0x7]  ;;  %v540_v3 = vmov 0   ;;  %v541_v4 = vmov 1   ;;  %v542_v6 = vmov 2   ;;  %v543_v7 = vmov 3  }
  0x1f   : > { %496 = vset.pattern.permute.xlu0 %v540_v3  ;;  %497 = vset.pattern.permute.xlu1 %v541_v4  ;;  %v234_v5 = vld [vmem:[%s648_s2] sm:$0x7]  ;;  %v241_v8 = vlaneseq  ;;  %v446_v12 = vld [vmem:[%s211_s9 + $0x4] sm:$0xf]  ;;  %s449_s11 = sshll.u32 (%p599_p6), %s530_s14, 2 }
  0x20   : > { %238 = vperm.xlu0 %496, %v233_v2   ;;  %253 = vperm.xlu1 %497, %v233_v2   ;;  %v235_v11 = vld [vmem:[%s211_s9] sm:$0xf]  ;;  %s322_s19 = scalar_lea.vmem (%p599_p6), %s649_s3, %s449_s11 }
  0x21   : > { %v242_v9 = vshrl.u32 %v241_v8, 7 }
  0x23   : > { %v243_v10 = vsub.s32 0, %v242_v9  ;;  %v258_v13 = vsub.s32 1, %v242_v9  ;;  %v268_v14 = vsub.s32 2, %v242_v9  ;;  %v278_v23 = vsub.s32 3, %v242_v9 }
  0x24   : > { %248 = vperm.xlu0 %496, %v234_v5   ;;  %498 = vset.pattern.permute.xlu1 %v542_v6 }
  0x25   : > { %263 = vperm.xlu1 %498, %v233_v2   ;;  %v244_v15 = vrot.slane %v235_v11, %v243_v10  ;;  %v288_v16 = vrot.slane %v446_v12, %v243_v10  ;;  %v259_v19 = vrot.slane %v235_v11, %v258_v13  ;;  %v294_v20 = vrot.slane %v446_v12, %v258_v13 }
  0x26   : > { %v269_v21 = vrot.slane %v235_v11, %v268_v14  ;;  %v300_v22 = vrot.slane %v446_v12, %v268_v14  ;;  %v279_v34 = vrot.slane %v235_v11, %v278_v23  ;;  %v306_v35 = vrot.slane %v446_v12, %v278_v23 }
  0x28   : > { %499 = vset.pattern.permute.xlu0 %v543_v7 }
  0x29   : > { %273 = vperm.xlu0 %499, %v233_v2  }
  0x9b   : > { %v239_v17 = vpop.permute.xlu0 %238  ;;  %v254_v18 = vpop.permute.xlu1 %253 }
  0x9c   : > { %v245_v24 = vmul.f32 %v244_v15, %v239_v17  ;;  %v289_v25 = vmul.f32 %v288_v16, %v239_v17  ;;  %v260_v27 = vmul.f32 %v259_v19, %v254_v18  ;;  %v295_v28 = vmul.f32 %v294_v20, %v254_v18 }
  0x9f   : > { %v249_v26 = vpop.permute.xlu0 %248 }
  0xa0   : > { %v251_v29 = vadd.f32 %v249_v26, %v245_v24  ;;  %v290_v30 = vadd.f32 %v289_v25, %v249_v26  ;;  %v264_v31 = vpop.permute.xlu1 %263 }
  0xa1   : > { %v270_v32 = vmul.f32 %v269_v21, %v264_v31  ;;  %v301_v33 = vmul.f32 %v300_v22, %v264_v31 }
  0xa2   : > { %v261_v36 = vadd.f32 %v260_v27, %v251_v29  ;;  %v296_v37 = vadd.f32 %v295_v28, %v290_v30 }
  0xa4   : > { %v271_v38 = vadd.f32 %v270_v32, %v261_v36  ;;  %v302_v39 = vadd.f32 %v301_v33, %v296_v37  ;;  %v274_v40 = vpop.permute.xlu0 %273 }
  0xa5   : > { %v280_v41 = vmul.f32 %v279_v34, %v274_v40  ;;  %v307_v42 = vmul.f32 %v306_v35, %v274_v40  ;;  %317 = sbr.rel (!%p599_p6) target bundleno = 178 (0xb2), region = 77 }
  0xa7   : > { %v281_v43 = vadd.f32 %v280_v41, %v271_v38  ;;  %v308_v44 = vadd.f32 %v307_v42, %v302_v39 }
  0xa9   : > { %282 = vst [vmem:[%s230_s10] sm:$0x7] %v281_v43  ;;  %447 = vst [vmem:[%s230_s10 + $0x4] sm:$0x7] %v308_v44 }
  0xb0   : > { %v339_v45 = vld [vmem:[%s230_s10] sm:$0xf]  ;;  %v341_v46 = vld [vmem:[%s230_s10 + $0x4] sm:$0xf] }
  0xb1   : > { %340 = vst [vmem:[%s322_s19] sm:$0xf] %v339_v45  ;;  %342 = vst [vmem:[%s322_s19 + $0x8] sm:$0xf] %v341_v46 }
  0xb2 PF: > { %s13_s16 = sadd.s32 1, %s538_s16   ;;  %s651_s12 = smov %s526_s13 }
  0xb3   : > { %p10_p11 = scmp.ge.s32.totalorder %s13_s16, 4   ;;  %s652_s13 = smov %s604_s22 }
  0xb4   : > { %s653_s14 = smov %s534_s15  ;;  %s654_s15 = smov %s656_s17 }
  0xb5   :  { %12 = sbr.rel (!%p10_p11) target bundleno = 3 (0x3), region = 151 }

</bundles_post_ra>
